<compile_context>
chip_gen: v5e
topology: v5e:2x2
jax: 0.10.0
libtpu: 0.0.40
codegen_flags: <defaults>
</compile_context>

<pallas_src>
import jax
import jax.numpy as jnp
from jax.experimental import pallas as pl
from jax.experimental.pallas import tpu as pltpu


def _residual_block_kernel(x_ref, o_ref):
    # blocks(x) + residual  ==  x + x  (both are nn.Identity)
    x = x_ref[...]
    o_ref[...] = x + x


@jax.jit
def _forward(x):
    orig_shape = x.shape
    dtype = x.dtype
    n = x.size
    itemsize = jnp.dtype(dtype).itemsize

    # Pick the widest lane count that divides n -> lane-dense, pad-free path.
    lanes = None
    for cand in (512, 256, 128):
        if n % cand == 0:
            lanes = cand
            break
    if lanes is None:
        lanes = 512
        rows = pl.cdiv(n, lanes)
        pad = rows * lanes - n
    else:
        rows = n // lanes
        pad = 0

    x_flat = x.reshape(-1)
    if pad:
        x_flat = jnp.pad(x_flat, (0, pad))
    x2d = x_flat.reshape(rows, lanes)

    # ~2 MiB blocks; row count a multiple of 32 sublanes (packs cleanly for
    # f32 / bf16 / int8).
    target_rows = max(32, (((2 * 1024 * 1024) // (lanes * itemsize)) // 32) * 32)
    if rows <= target_rows:
        tm = rows  # single block == full array extent (allowed by layout rules)
        grid = (1,)
    else:
        tm = target_rows
        grid = (pl.cdiv(rows, tm),)  # ragged last block masked by Pallas

    out2d = pl.pallas_call(
        _residual_block_kernel,
        out_shape=jax.ShapeDtypeStruct((rows, lanes), dtype),
        grid_spec=pltpu.PrefetchScalarGridSpec(
            num_scalar_prefetch=0,
            grid=grid,
            in_specs=[pl.BlockSpec((tm, lanes), lambda i: (i, 0))],
            out_specs=pl.BlockSpec((tm, lanes), lambda i: (i, 0)),
        ),
        compiler_params=pltpu.CompilerParams(
            dimension_semantics=("parallel",),
            vmem_limit_bytes=32 * 1024 * 1024,
        ),
    )(x2d)

    out_flat = out2d.reshape(-1)
    if pad:
        out_flat = out_flat[:n]
    return out_flat.reshape(orig_shape)


def residual_block_forward(x, in_channels, out_channels):
    """Pallas implementation of ResidualBlock.forward for NCHW input x."""
    assert x.shape[1] == in_channels, "channel dim mismatch with in_channels"
    del out_channels  # both `blocks` and `shortcut` are Identity -> out = 2*x
    return _forward(x)


if __name__ == "__main__":
    key = jax.random.PRNGKey(0)

    # Small, module-consistent shape: batch=2, channels=4, spatial=16x16.
    B, C, H, W = 2, 4, 16, 16
    x = jax.random.normal(key, (B, C, H, W), dtype=jnp.float32)
    ref = x + x
    out = jax.block_until_ready(residual_block_forward(x, in_channels=C, out_channels=C))
    assert out.shape == x.shape and out.dtype == x.dtype
    assert jnp.allclose(out, ref, atol=1e-6), "mismatch vs reference"

    # Larger input: still a single full-extent block, no padding.
    x_mid = jax.random.normal(jax.random.PRNGKey(1), (4, 32, 56, 56), jnp.float32)
    out_mid = jax.block_until_ready(residual_block_forward(x_mid, 32, 32))
    assert jnp.allclose(out_mid, x_mid + x_mid, atol=1e-6), "mismatch (mid)"

    # Large input: exercises the multi-step pipelined grid path.
    x_big = jax.random.normal(jax.random.PRNGKey(2), (8, 64, 64, 64), jnp.float32)
    out_big = jax.block_until_ready(residual_block_forward(x_big, 64, 64))
    assert jnp.allclose(out_big, x_big + x_big, atol=1e-6), "mismatch (big)"

    # Odd size: exercises the zero-pad fallback path.
    x_odd = jax.random.normal(jax.random.PRNGKey(3), (2, 3, 7, 5), jnp.float32)
    out_odd = jax.block_until_ready(residual_block_forward(x_odd, 3, 3))
    assert jnp.allclose(out_odd, x_odd + x_odd, atol=1e-6), "mismatch (odd)"

    print("KERNEL_OK")
</pallas_src>

<mosaic_0001>
module attributes {stable_mosaic.version = 11 : i64} {
  func.func @_residual_block_kernel(%arg0: i32, %arg1: memref<4x512xf32, #tpu.memory_space<vmem>>, %arg2: memref<4x512xf32, #tpu.memory_space<vmem>>) attributes {dimension_semantics = [#tpu.dimension_semantics<parallel>], iteration_bounds = array<i64: 1>, scalar_prefetch = 0 : i64, scratch_operands = 0 : i64, tpu.core_type = #tpu.core_type<tc>, window_params = [{transform_indices = @transform_0, window_bounds = array<i64: 4, 512>}, {transform_indices = @transform_1, window_bounds = array<i64: 4, 512>}]} {
    %c0 = arith.constant 0 : index
    %c0_0 = arith.constant 0 : index
    %0 = vector.load %arg1[%c0, %c0_0] : memref<4x512xf32, #tpu.memory_space<vmem>>, vector<4x512xf32>
    %1 = arith.addf %0, %0 : vector<4x512xf32>
    %c0_1 = arith.constant 0 : index
    %c0_2 = arith.constant 0 : index
    %2 = vector.load %arg2[%c0_1, %c0_2] : memref<4x512xf32, #tpu.memory_space<vmem>>, vector<4x512xf32>
    tpu.vector_store %arg2[%c0_1, %c0_2], %1 {strides = array<i32>} : memref<4x512xf32, #tpu.memory_space<vmem>>, vector<4x512xf32>,
    return
  }
  func.func @transform_0(%arg0: i32) -> (i32, i32) {
    %c0_i32 = arith.constant 0 : i32
    %c0_i32_0 = arith.constant 0 : i32
    return %arg0, %c0_i32 : i32, i32
  }
  func.func @transform_1(%arg0: i32) -> (i32, i32) {
    %c0_i32 = arith.constant 0 : i32
    %c0_i32_0 = arith.constant 0 : i32
    return %arg0, %c0_i32 : i32, i32
  }
}

</mosaic_0001>

<bundles_post_ra>
// kernel: _forward.1
= control target key start
LH: loop header
LB: loop body
LE: loop exit
PB: predicated region body
PF: predicated region fallthrough
CT: control target
= control target key end

     0   :  { %s40_s0 = inlined_call_operand.vmem [shape: f32[4,512], index: 0, kind: input, shape index: {}]   ;;  %s41_s1 = inlined_call_operand.vmem [shape: f32[4,512], index: 1, kind: output, shape index: {}]  }
   0x1   :  { %v8_v0 = vld [vmem:[%s40_s0] sm:$0xff]  ;;  %v9_v1 = vld [vmem:[%s40_s0 + $0x8] sm:$0xff] }
   0x2   :  { %v10_v2 = vadd.f32 %v8_v0, %v8_v0  ;;  %v11_v3 = vadd.f32 %v9_v1, %v9_v1 }
   0x4   :  { %12 = vst [vmem:[%s41_s1] sm:$0xff] %v10_v2 }
   0x5   :  { %13 = vst [vmem:[%s41_s1 + $0x8] sm:$0xff] %v11_v3 }

</bundles_post_ra>
